<compile_context>
chip_gen: v5e
topology: v5e:2x2
jax: 0.10.0
libtpu: 0.0.40
codegen_flags: <defaults>
</compile_context>

<pallas_src>
import functools

import jax
import jax.numpy as jnp
from jax import lax
from jax.experimental import pallas as pl
from jax.experimental.pallas import tpu as pltpu

ACT_DTYPE = jnp.bfloat16   # activations / conv / fc weights on the MXU, f32 accumulate

_CONV_CFG = [  # (cin, cout, k, stride, pad) — mirrors the nn.Sequential
    (3, 32, 5, 2, 2),
    (32, 64, 3, 2, 1),
    (64, 128, 3, 2, 1),
]


def _round_up(x, m):
    return (x + m - 1) // m * m


def _vmem_limit(*nbytes):
    """Explicit per-call VMEM budget (double-buffer + slack), v7x-safe (<48 MiB)."""
    total = int(sum(nbytes))
    return int(min(48 * 1024 * 1024, 2 * total + (6 << 20)))


# ----------------------------- Pallas kernels ------------------------------

def _gemm_bias_relu_kernel(x_ref, w_ref, b_ref, o_ref):
    """One conv layer tile: (TM, K) @ (K, Cout) + bias, ReLU, store bf16."""
    acc = jnp.dot(x_ref[...], w_ref[...], preferred_element_type=jnp.float32)
    o_ref[...] = jnp.maximum(acc + b_ref[...], 0.0).astype(o_ref.dtype)


def _gemm_pool_fc_kernel(x_ref, w_ref, b_ref, fcw_ref, fcb_ref, o_ref, acc_ref,
                         *, m_valid, inv_area):
    """Last conv tile + masked global-avg-pool accumulation + fused Linear."""
    mt = pl.program_id(1)

    @pl.when(mt == 0)
    def _():
        acc_ref[...] = jnp.zeros_like(acc_ref)

    f, tm, k = x_ref.shape                       # (frames/block, rows/tile, K)
    x2 = x_ref[...].reshape(f * tm, k)           # tm % 16 == 0 -> layout-free merge
    y = jnp.dot(x2, w_ref[...], preferred_element_type=jnp.float32)
    y = jnp.maximum(y + b_ref[...], 0.0)         # bias + ReLU, f32
    y = y.reshape(f, tm, -1)
    # zero out padded rows (rows >= valid OH*OW of the frame) before pooling
    rid = mt * tm + lax.broadcasted_iota(jnp.int32, (1, tm, 1), 1)
    y = jnp.where(rid < m_valid, y, 0.0)
    acc_ref[...] += jnp.sum(y, axis=1)           # (F, C3) partial pool sums

    @pl.when(mt == pl.num_programs(1) - 1)
    def _():
        pooled = (acc_ref[...] * inv_area).astype(fcw_ref.dtype)      # bf16 (F, C3)
        feat = jnp.dot(pooled, fcw_ref[...], preferred_element_type=jnp.float32)
        o_ref[0] = (feat + fcb_ref[...]).astype(o_ref.dtype)          # (F, fdim)


# ------------------------------ JAX glue -----------------------------------

def _im2col(y, k, s, p):
    """NHWC bf16 -> (N, OH, OW, k*k*C) im2col patches (channel order (i*k+j)*C+c)."""
    n, h, w, c = y.shape
    oh = (h + 2 * p - k) // s + 1
    ow = (w + 2 * p - k) // s + 1
    yp = jnp.pad(y, ((0, 0), (p, p), (p, p), (0, 0)))
    cols = []
    for i in range(k):
        for j in range(k):
            cols.append(lax.slice(
                yp, (0, i, j, 0),
                (n, i + s * (oh - 1) + 1, j + s * (ow - 1) + 1, c),
                (1, s, s, 1)))
    return jnp.concatenate(cols, axis=-1), oh, ow


def conv_relu_gemm(y, w2d, b, k, s, p, tm_target=1024):
    """Conv2d(k,s,p)+ReLU as one M-tiled GEMM.  Returns (N, OH, OW, Cout) bf16."""
    n = y.shape[0]
    kdim, cout = w2d.shape
    col, oh, ow = _im2col(y, k, s, p)
    kc = col.shape[-1]
    if kc < kdim:                                 # conv1: pad K=75 -> 128 lanes
        col = jnp.pad(col, ((0, 0), (0, 0), (0, 0), (0, kdim - kc)))
    m = n * oh * ow                               # frames folded into M
    col = col.reshape(m, kdim)
    tm = min(tm_target, _round_up(m, 8))
    mp = _round_up(m, tm)
    if mp > m:
        col = jnp.pad(col, ((0, mp - m), (0, 0)))
    vmem = _vmem_limit(tm * kdim * 2, kdim * cout * 2, cout * 4, tm * cout * 2)
    out = pl.pallas_call(
        _gemm_bias_relu_kernel,
        out_shape=jax.ShapeDtypeStruct((mp, cout), ACT_DTYPE),
        grid=(mp // tm,),
        in_specs=[
            pl.BlockSpec((tm, kdim), lambda i: (i, 0)),
            pl.BlockSpec((kdim, cout), lambda i: (0, 0)),   # weights stay resident
            pl.BlockSpec((1, cout), lambda i: (0, 0)),
        ],
        out_specs=pl.BlockSpec((tm, cout), lambda i: (i, 0)),
        compiler_params=pltpu.CompilerParams(
            dimension_semantics=("parallel",),
            vmem_limit_bytes=vmem),
    )(col, w2d, b)
    return out[:m].reshape(n, oh, ow, cout)


def conv_pool_fc_fused(y, w2d, b, fc_w, fc_b, k, s, p):
    """Last Conv2d + ReLU + global avg pool + Linear, fused.  Returns (N, F) f32."""
    n = y.shape[0]
    kdim, cout = w2d.shape
    fdim = fc_w.shape[1]
    col, oh, ow = _im2col(y, k, s, p)
    m = oh * ow                                   # valid rows per frame
    tm = _round_up(m, 16) if m <= 1024 else 1024  # row tile (multiple of 16)
    n_m = -(-m // tm)
    mp = n_m * tm
    fb = max(1, min(n, 512 // mp)) if mp < 512 else 1   # frames per grid step
    np_ = -(-n // fb) * fb
    col = col.reshape(n, m, kdim)
    col = jnp.pad(col, ((0, np_ - n), (0, mp - m), (0, 0)))
    kernel = functools.partial(_gemm_pool_fc_kernel, m_valid=m,
                               inv_area=1.0 / float(m))
    vmem = _vmem_limit(fb * tm * kdim * 2, kdim * cout * 2, cout * 4,
                       cout * fdim * 2, fdim * 4, fb * fdim * 4, fb * cout * 4)
    out = pl.pallas_call(
        kernel,
        out_shape=jax.ShapeDtypeStruct((np_ // fb, fb, fdim), jnp.float32),
        grid=(np_ // fb, n_m),                    # reduction (row-tile) axis last
        in_specs=[
            pl.BlockSpec((fb, tm, kdim), lambda nb, mt: (nb, mt, 0)),
            pl.BlockSpec((kdim, cout), lambda nb, mt: (0, 0)),
            pl.BlockSpec((1, cout), lambda nb, mt: (0, 0)),
            pl.BlockSpec((cout, fdim), lambda nb, mt: (0, 0)),
            pl.BlockSpec((1, fdim), lambda nb, mt: (0, 0)),
        ],
        out_specs=pl.BlockSpec((1, fb, fdim), lambda nb, mt: (nb, 0, 0)),
        scratch_shapes=[pltpu.VMEM((fb, cout), jnp.float32)],
        compiler_params=pltpu.CompilerParams(
            dimension_semantics=("parallel", "arbitrary"),
            vmem_limit_bytes=vmem),
    )(col, w2d, b, fc_w, fc_b)
    return out.reshape(np_, fdim)[:n]


# ------------------------------ parameters ---------------------------------

def init_params(key, feature_dim):
    params = {"convs": []}
    ks = jax.random.split(key, len(_CONV_CFG) + 1)
    for k_i, (cin, cout, ksz, s, p) in zip(ks[:-1], _CONV_CFG):
        wk, bk = jax.random.split(k_i)
        fan_in = cin * ksz * ksz
        w = jax.random.normal(wk, (ksz, ksz, cin, cout), jnp.float32) \
            * jnp.sqrt(2.0 / fan_in)                           # HWIO layout
        b = jax.random.normal(bk, (cout,), jnp.float32) * 0.01
        params["convs"].append({"w": w, "b": b, "k": ksz, "s": s, "p": p})
    wk, bk = jax.random.split(ks[-1])
    params["fc_w"] = jax.random.normal(wk, (128, feature_dim), jnp.float32) \
        * jnp.sqrt(1.0 / 128)
    params["fc_b"] = jax.random.normal(bk, (feature_dim,), jnp.float32) * 0.01
    return params


def prepare_pallas_params(params):
    """HWIO -> (kh*kw*cin [pad to >=128 for conv1], cout) bf16 GEMM weights."""
    prepped = {"convs": []}
    for layer in params["convs"]:
        kh, kw, cin, cout = layer["w"].shape
        kdim = kh * kw * cin
        w2d = layer["w"].reshape(kdim, cout)              # index (i*kw+j)*cin+c
        if kdim < 128:
            w2d = jnp.pad(w2d, ((0, 128 - kdim), (0, 0)))
        prepped["convs"].append((w2d.astype(ACT_DTYPE),
                                 layer["b"].reshape(1, cout).astype(jnp.float32)))
    prepped["fc_w"] = params["fc_w"].astype(ACT_DTYPE)    # bf16 FC operands
    prepped["fc_b"] = params["fc_b"].reshape(1, -1).astype(jnp.float32)
    return prepped


# ------------------------------ forward ------------------------------------

def video_encoder_forward(x, pparams):
    """x: (B, T, C, H, W) — same convention as the PyTorch module."""
    B, T, C, H, W = x.shape
    y = x.reshape(B * T, C, H, W).transpose(0, 2, 3, 1).astype(ACT_DTYPE)  # NHWC bf16
    for idx, (_, _, ksz, s, p) in enumerate(_CONV_CFG[:-1]):
        w2d, b = pparams["convs"][idx]
        y = conv_relu_gemm(y, w2d, b, ksz, s, p)
    _, _, ksz, s, p = _CONV_CFG[-1]
    w2d, b = pparams["convs"][-1]
    feat = conv_pool_fc_fused(y, w2d, b, pparams["fc_w"], pparams["fc_b"],
                              ksz, s, p)
    return feat.reshape(B, T, -1)


def ref_forward(x, params):
    """Pure-JAX f32 reference (lax conv) to validate the Pallas path."""
    B, T, C, H, W = x.shape
    y = x.reshape(B * T, C, H, W).transpose(0, 2, 3, 1)
    for layer in params["convs"]:
        s, p = layer["s"], layer["p"]
        y = lax.conv_general_dilated(
            y, layer["w"], window_strides=(s, s), padding=((p, p), (p, p)),
            dimension_numbers=("NHWC", "HWIO", "NHWC")) + layer["b"]
        y = jnp.maximum(y, 0.0)
    y = y.mean(axis=(1, 2))
    y = y @ params["fc_w"] + params["fc_b"]
    return y.reshape(B, T, -1)


if __name__ == "__main__":
    key = jax.random.PRNGKey(0)
    k_x, k_p = jax.random.split(key)

    B, T, C, H, W = 2, 2, 3, 16, 16
    feature_dim = 128

    x = jax.random.normal(k_x, (B, T, C, H, W), jnp.float32)
    params = init_params(k_p, feature_dim)
    pparams = prepare_pallas_params(params)

    fwd = jax.jit(video_encoder_forward)
    out = jax.block_until_ready(fwd(x, pparams))

    ref = ref_forward(x, params)
    assert out.shape == (B, T, feature_dim), out.shape
    assert bool(jnp.all(jnp.isfinite(out)))
    assert bool(jnp.allclose(out, ref, rtol=5e-2, atol=5e-2)), \
        float(jnp.max(jnp.abs(out - ref)))

    print("KERNEL_OK")
</pallas_src>

<mosaic_0001>
module attributes {stable_mosaic.version = 11 : i64} {
  func.func @_gemm_bias_relu_kernel(%arg0: i32, %arg1: memref<256x128xbf16, #tpu.memory_space<vmem>>, %arg2: memref<128x32xbf16, #tpu.memory_space<vmem>>, %arg3: memref<1x32xf32, #tpu.memory_space<vmem>>, %arg4: memref<256x32xbf16, #tpu.memory_space<vmem>>) attributes {dimension_semantics = [#tpu.dimension_semantics<parallel>], iteration_bounds = array<i64: 1>, scalar_prefetch = 0 : i64, scratch_operands = 0 : i64, tpu.core_type = #tpu.core_type<tc>, window_params = [{transform_indices = @transform_0, window_bounds = array<i64: 256, 128>}, {pipeline_mode = #tpu.pipeline_mode<synchronous>, transform_indices = @transform_1, window_bounds = array<i64: 128, 32>}, {pipeline_mode = #tpu.pipeline_mode<synchronous>, transform_indices = @transform_2, window_bounds = array<i64: 1, 32>}, {transform_indices = @transform_3, window_bounds = array<i64: 256, 32>}]} {
    %c0 = arith.constant 0 : index
    %c0_0 = arith.constant 0 : index
    %0 = vector.load %arg1[%c0, %c0_0] : memref<256x128xbf16, #tpu.memory_space<vmem>>, vector<256x128xbf16>
    %c0_1 = arith.constant 0 : index
    %c0_2 = arith.constant 0 : index
    %1 = vector.load %arg2[%c0_1, %c0_2] : memref<128x32xbf16, #tpu.memory_space<vmem>>, vector<128x32xbf16>
    %cst = arith.constant dense<0.000000e+00> : vector<256x32xf32>
    %2 = tpu.matmul %0, %1, %cst {dimension_numbers = #tpu.dot_dimension_numbers<[1], [0], [0], [1], [0, 0, 1, 1], [], []>} : vector<256x128xbf16>, vector<128x32xbf16>, vector<256x32xf32> -> vector<256x32xf32>
    %c0_3 = arith.constant 0 : index
    %c0_4 = arith.constant 0 : index
    %3 = vector.load %arg3[%c0_3, %c0_4] : memref<1x32xf32, #tpu.memory_space<vmem>>, vector<1x32xf32>
    %4 = vector.broadcast %3 : vector<1x32xf32> to vector<256x32xf32>
    %5 = arith.addf %2, %4 : vector<256x32xf32>
    %cst_5 = arith.constant 0.000000e+00 : f32
    %6 = vector.broadcast %cst_5 : f32 to vector<256x32xf32>
    %7 = arith.maximumf %5, %6 : vector<256x32xf32>
    %8 = arith.truncf %7 : vector<256x32xf32> to vector<256x32xbf16>
    %c0_6 = arith.constant 0 : index
    %c0_7 = arith.constant 0 : index
    %9 = vector.load %arg4[%c0_6, %c0_7] : memref<256x32xbf16, #tpu.memory_space<vmem>>, vector<256x32xbf16>
    tpu.vector_store %arg4[%c0_6, %c0_7], %8 {strides = array<i32>} : memref<256x32xbf16, #tpu.memory_space<vmem>>, vector<256x32xbf16>,
    return
  }
  func.func @transform_0(%arg0: i32) -> (i32, i32) {
    %c0_i32 = arith.constant 0 : i32
    %c0_i32_0 = arith.constant 0 : i32
    return %arg0, %c0_i32 : i32, i32
  }
  func.func @transform_1(%arg0: i32) -> (i32, i32) {
    %c0_i32 = arith.constant 0 : i32
    %c0_i32_0 = arith.constant 0 : i32
    %c0_i32_1 = arith.constant 0 : i32
    return %c0_i32, %c0_i32_0 : i32, i32
  }
  func.func @transform_2(%arg0: i32) -> (i32, i32) {
    %c0_i32 = arith.constant 0 : i32
    %c0_i32_0 = arith.constant 0 : i32
    %c0_i32_1 = arith.constant 0 : i32
    return %c0_i32, %c0_i32_0 : i32, i32
  }
  func.func @transform_3(%arg0: i32) -> (i32, i32) {
    %c0_i32 = arith.constant 0 : i32
    %c0_i32_0 = arith.constant 0 : i32
    return %arg0, %c0_i32 : i32, i32
  }
}

module attributes {stable_mosaic.version = 11 : i64} {
  func.func @_gemm_bias_relu_kernel(%arg0: i32, %arg1: memref<64x288xbf16, #tpu.memory_space<vmem>>, %arg2: memref<288x64xbf16, #tpu.memory_space<vmem>>, %arg3: memref<1x64xf32, #tpu.memory_space<vmem>>, %arg4: memref<64x64xbf16, #tpu.memory_space<vmem>>) attributes {dimension_semantics = [#tpu.dimension_semantics<parallel>], iteration_bounds = array<i64: 1>, scalar_prefetch = 0 : i64, scratch_operands = 0 : i64, tpu.core_type = #tpu.core_type<tc>, window_params = [{transform_indices = @transform_0, window_bounds = array<i64: 64, 288>}, {pipeline_mode = #tpu.pipeline_mode<synchronous>, transform_indices = @transform_1, window_bounds = array<i64: 288, 64>}, {pipeline_mode = #tpu.pipeline_mode<synchronous>, transform_indices = @transform_2, window_bounds = array<i64: 1, 64>}, {transform_indices = @transform_3, window_bounds = array<i64: 64, 64>}]} {
    %c0 = arith.constant 0 : index
    %c0_0 = arith.constant 0 : index
    %0 = vector.load %arg1[%c0, %c0_0] : memref<64x288xbf16, #tpu.memory_space<vmem>>, vector<64x288xbf16>
    %c0_1 = arith.constant 0 : index
    %c0_2 = arith.constant 0 : index
    %1 = vector.load %arg2[%c0_1, %c0_2] : memref<288x64xbf16, #tpu.memory_space<vmem>>, vector<288x64xbf16>
    %cst = arith.constant dense<0.000000e+00> : vector<64x64xf32>
    %2 = tpu.matmul %0, %1, %cst {dimension_numbers = #tpu.dot_dimension_numbers<[1], [0], [0], [1], [0, 0, 1, 1], [], []>} : vector<64x288xbf16>, vector<288x64xbf16>, vector<64x64xf32> -> vector<64x64xf32>
    %c0_3 = arith.constant 0 : index
    %c0_4 = arith.constant 0 : index
    %3 = vector.load %arg3[%c0_3, %c0_4] : memref<1x64xf32, #tpu.memory_space<vmem>>, vector<1x64xf32>
    %4 = vector.broadcast %3 : vector<1x64xf32> to vector<64x64xf32>
    %5 = arith.addf %2, %4 : vector<64x64xf32>
    %cst_5 = arith.constant 0.000000e+00 : f32
    %6 = vector.broadcast %cst_5 : f32 to vector<64x64xf32>
    %7 = arith.maximumf %5, %6 : vector<64x64xf32>
    %8 = arith.truncf %7 : vector<64x64xf32> to vector<64x64xbf16>
    %c0_6 = arith.constant 0 : index
    %c0_7 = arith.constant 0 : index
    %9 = vector.load %arg4[%c0_6, %c0_7] : memref<64x64xbf16, #tpu.memory_space<vmem>>, vector<64x64xbf16>
    tpu.vector_store %arg4[%c0_6, %c0_7], %8 {strides = array<i32>} : memref<64x64xbf16, #tpu.memory_space<vmem>>, vector<64x64xbf16>,
    return
  }
  func.func @transform_0(%arg0: i32) -> (i32, i32) {
    %c0_i32 = arith.constant 0 : i32
    %c0_i32_0 = arith.constant 0 : i32
    return %arg0, %c0_i32 : i32, i32
  }
  func.func @transform_1(%arg0: i32) -> (i32, i32) {
    %c0_i32 = arith.constant 0 : i32
    %c0_i32_0 = arith.constant 0 : i32
    %c0_i32_1 = arith.constant 0 : i32
    return %c0_i32, %c0_i32_0 : i32, i32
  }
  func.func @transform_2(%arg0: i32) -> (i32, i32) {
    %c0_i32 = arith.constant 0 : i32
    %c0_i32_0 = arith.constant 0 : i32
    %c0_i32_1 = arith.constant 0 : i32
    return %c0_i32, %c0_i32_0 : i32, i32
  }
  func.func @transform_3(%arg0: i32) -> (i32, i32) {
    %c0_i32 = arith.constant 0 : i32
    %c0_i32_0 = arith.constant 0 : i32
    return %arg0, %c0_i32 : i32, i32
  }
}

module attributes {stable_mosaic.version = 11 : i64} {
  func.func @_gemm_pool_fc_kernel(%arg0: i32, %arg1: i32, %arg2: memref<4x16x576xbf16, #tpu.memory_space<vmem>>, %arg3: memref<576x128xbf16, #tpu.memory_space<vmem>>, %arg4: memref<1x128xf32, #tpu.memory_space<vmem>>, %arg5: memref<128x128xbf16, #tpu.memory_space<vmem>>, %arg6: memref<1x128xf32, #tpu.memory_space<vmem>>, %arg7: memref<1x4x128xf32, #tpu.memory_space<vmem>>, %arg8: memref<4x128xf32, #tpu.memory_space<vmem>>) attributes {dimension_semantics = [#tpu.dimension_semantics<parallel>, #tpu.dimension_semantics<arbitrary>], iteration_bounds = array<i64: 1, 1>, scalar_prefetch = 0 : i64, scratch_operands = 1 : i64, tpu.core_type = #tpu.core_type<tc>, window_params = [{transform_indices = @transform_0, window_bounds = array<i64: 4, 16, 576>}, {pipeline_mode = #tpu.pipeline_mode<synchronous>, transform_indices = @transform_1, window_bounds = array<i64: 576, 128>}, {pipeline_mode = #tpu.pipeline_mode<synchronous>, transform_indices = @transform_2, window_bounds = array<i64: 1, 128>}, {pipeline_mode = #tpu.pipeline_mode<synchronous>, transform_indices = @transform_3, window_bounds = array<i64: 128, 128>}, {pipeline_mode = #tpu.pipeline_mode<synchronous>, transform_indices = @transform_4, window_bounds = array<i64: 1, 128>}, {transform_indices = @transform_5, window_bounds = array<i64: 1, 4, 128>}]} {
    %c0_i32 = arith.constant 0 : i32
    %0 = arith.cmpi eq, %arg1, %c0_i32 : i32
    %1 = arith.extui %0 : i1 to i32
    %c0_i32_0 = arith.constant 0 : i32
    %2 = arith.cmpi ne, %1, %c0_i32_0 : i32
    scf.if %2 {
      %cst_16 = arith.constant 0.000000e+00 : f32
      %30 = vector.broadcast %cst_16 : f32 to vector<4x128xf32>
      %c0_17 = arith.constant 0 : index
      %c0_18 = arith.constant 0 : index
      %31 = vector.load %arg8[%c0_17, %c0_18] : memref<4x128xf32, #tpu.memory_space<vmem>>, vector<4x128xf32>
      tpu.vector_store %arg8[%c0_17, %c0_18], %30 {strides = array<i32>} : memref<4x128xf32, #tpu.memory_space<vmem>>, vector<4x128xf32>,
    } else {
    }
    %c0 = arith.constant 0 : index
    %c0_1 = arith.constant 0 : index
    %c0_2 = arith.constant 0 : index
    %3 = vector.load %arg2[%c0, %c0_1, %c0_2] : memref<4x16x576xbf16, #tpu.memory_space<vmem>>, vector<4x16x576xbf16>
    %4 = vector.shape_cast %3 : vector<4x16x576xbf16> to vector<64x576xbf16>
    %c0_3 = arith.constant 0 : index
    %c0_4 = arith.constant 0 : index
    %5 = vector.load %arg3[%c0_3, %c0_4] : memref<576x128xbf16, #tpu.memory_space<vmem>>, vector<576x128xbf16>
    %cst = arith.constant dense<0.000000e+00> : vector<64x128xf32>
    %6 = tpu.matmul %4, %5, %cst {dimension_numbers = #tpu.dot_dimension_numbers<[1], [0], [0], [1], [0, 0, 1, 1], [], []>} : vector<64x576xbf16>, vector<576x128xbf16>, vector<64x128xf32> -> vector<64x128xf32>
    %c0_5 = arith.constant 0 : index
    %c0_6 = arith.constant 0 : index
    %7 = vector.load %arg4[%c0_5, %c0_6] : memref<1x128xf32, #tpu.memory_space<vmem>>, vector<1x128xf32>
    %8 = vector.broadcast %7 : vector<1x128xf32> to vector<64x128xf32>
    %9 = arith.addf %6, %8 : vector<64x128xf32>
    %cst_7 = arith.constant 0.000000e+00 : f32
    %10 = vector.broadcast %cst_7 : f32 to vector<64x128xf32>
    %11 = arith.maximumf %9, %10 : vector<64x128xf32>
    %12 = vector.shape_cast %11 : vector<64x128xf32> to vector<4x16x128xf32>
    %c16_i32 = arith.constant 16 : i32
    %13 = arith.muli %arg1, %c16_i32 : i32
    %14 = tpu.iota {dimensions = array<i32: 1>} : vector<1x16x1xi32>
    %15 = vector.broadcast %13 : i32 to vector<1x16x1xi32>
    %16 = arith.addi %15, %14 : vector<1x16x1xi32>
    %c4_i32 = arith.constant 4 : i32
    %17 = vector.broadcast %c4_i32 : i32 to vector<1x16x1xi32>
    %18 = arith.cmpi slt, %16, %17 : vector<1x16x1xi32>
    %cst_8 = arith.constant 0.000000e+00 : f32
    %19 = vector.shape_cast %18 : vector<1x16x1xi1> to vector<1x16x1xi1>
    %20 = vector.broadcast %19 : vector<1x16x1xi1> to vector<4x16x128xi1>
    %21 = vector.broadcast %cst_8 : f32 to vector<4x16x128xf32>
    %22 = arith.select %20, %12, %21 : vector<4x16x128xi1>, vector<4x16x128xf32>
    %c0_9 = arith.constant 0 : index
    %c0_10 = arith.constant 0 : index
    %23 = vector.load %arg8[%c0_9, %c0_10] : memref<4x128xf32, #tpu.memory_space<vmem>>, vector<4x128xf32>
    %cst_11 = arith.constant dense<0.000000e+00> : vector<4x128xf32>
    %24 = vector.multi_reduction <add>, %22, %cst_11 [1] : vector<4x16x128xf32> to vector<4x128xf32>
    %25 = arith.addf %23, %24 : vector<4x128xf32>
    %c0_12 = arith.constant 0 : index
    %c0_13 = arith.constant 0 : index
    %26 = vector.load %arg8[%c0_12, %c0_13] : memref<4x128xf32, #tpu.memory_space<vmem>>, vector<4x128xf32>
    tpu.vector_store %arg8[%c0_12, %c0_13], %25 {strides = array<i32>} : memref<4x128xf32, #tpu.memory_space<vmem>>, vector<4x128xf32>,
    %c0_i32_14 = arith.constant 0 : i32
    %27 = arith.cmpi eq, %arg1, %c0_i32_14 : i32
    %28 = arith.extui %27 : i1 to i32
    %c0_i32_15 = arith.constant 0 : i32
    %29 = arith.cmpi ne, %28, %c0_i32_15 : i32
    scf.if %29 {
      %c0_16 = arith.constant 0 : index
      %c0_17 = arith.constant 0 : index
      %30 = vector.load %arg8[%c0_16, %c0_17] : memref<4x128xf32, #tpu.memory_space<vmem>>, vector<4x128xf32>
      %cst_18 = arith.constant 2.500000e-01 : f32
      %31 = vector.broadcast %cst_18 : f32 to vector<4x128xf32>
      %32 = arith.mulf %30, %31 : vector<4x128xf32>
      %33 = arith.truncf %32 : vector<4x128xf32> to vector<4x128xbf16>
      %c0_19 = arith.constant 0 : index
      %c0_20 = arith.constant 0 : index
      %34 = vector.load %arg5[%c0_19, %c0_20] : memref<128x128xbf16, #tpu.memory_space<vmem>>, vector<128x128xbf16>
      %cst_21 = arith.constant dense<0.000000e+00> : vector<4x128xf32>
      %35 = tpu.matmul %33, %34, %cst_21 {dimension_numbers = #tpu.dot_dimension_numbers<[1], [0], [0], [1], [0, 0, 1, 1], [], []>} : vector<4x128xbf16>, vector<128x128xbf16>, vector<4x128xf32> -> vector<4x128xf32>
      %c0_22 = arith.constant 0 : index
      %c0_23 = arith.constant 0 : index
      %36 = vector.load %arg6[%c0_22, %c0_23] : memref<1x128xf32, #tpu.memory_space<vmem>>, vector<1x128xf32>
      %37 = vector.broadcast %36 : vector<1x128xf32> to vector<4x128xf32>
      %38 = arith.addf %35, %37 : vector<4x128xf32>
      %c0_24 = arith.constant 0 : index
      %c0_25 = arith.constant 0 : index
      %c0_26 = arith.constant 0 : index
      %39 = vector.load %arg7[%c0_24, %c0_25, %c0_26] : memref<1x4x128xf32, #tpu.memory_space<vmem>>, vector<1x4x128xf32>
      %40 = vector.shape_cast %39 : vector<1x4x128xf32> to vector<4x128xf32>
      %41 = vector.shape_cast %38 : vector<4x128xf32> to vector<1x4x128xf32>
      tpu.vector_store %arg7[%c0_24, %c0_25, %c0_26], %41 {strides = array<i32>} : memref<1x4x128xf32, #tpu.memory_space<vmem>>, vector<1x4x128xf32>,
    } else {
    }
    return
  }
  func.func @transform_0(%arg0: i32, %arg1: i32) -> (i32, i32, i32) {
    %c0_i32 = arith.constant 0 : i32
    %c0_i32_0 = arith.constant 0 : i32
    return %arg0, %arg1, %c0_i32 : i32, i32, i32
  }
  func.func @transform_1(%arg0: i32, %arg1: i32) -> (i32, i32) {
    %c0_i32 = arith.constant 0 : i32
    %c0_i32_0 = arith.constant 0 : i32
    %c0_i32_1 = arith.constant 0 : i32
    return %c0_i32, %c0_i32_0 : i32, i32
  }
  func.func @transform_2(%arg0: i32, %arg1: i32) -> (i32, i32) {
    %c0_i32 = arith.constant 0 : i32
    %c0_i32_0 = arith.constant 0 : i32
    %c0_i32_1 = arith.constant 0 : i32
    return %c0_i32, %c0_i32_0 : i32, i32
  }
  func.func @transform_3(%arg0: i32, %arg1: i32) -> (i32, i32) {
    %c0_i32 = arith.constant 0 : i32
    %c0_i32_0 = arith.constant 0 : i32
    %c0_i32_1 = arith.constant 0 : i32
    return %c0_i32, %c0_i32_0 : i32, i32
  }
  func.func @transform_4(%arg0: i32, %arg1: i32) -> (i32, i32) {
    %c0_i32 = arith.constant 0 : i32
    %c0_i32_0 = arith.constant 0 : i32
    %c0_i32_1 = arith.constant 0 : i32
    return %c0_i32, %c0_i32_0 : i32, i32
  }
  func.func @transform_5(%arg0: i32, %arg1: i32) -> (i32, i32, i32) {
    %c0_i32 = arith.constant 0 : i32
    %c0_i32_0 = arith.constant 0 : i32
    %c0_i32_1 = arith.constant 0 : i32
    return %arg0, %c0_i32, %c0_i32_0 : i32, i32, i32
  }
}

</mosaic_0001>

<bundles_post_ra>
// kernel: video_encoder_forward.3
= control target key start
LH: loop header
LB: loop body
LE: loop exit
PB: predicated region body
PF: predicated region fallthrough
CT: control target
= control target key end

     0   :  { %vm363_vm0 = vcmask 257024   ;;  %s802_s1 = inlined_call_operand.vmem [shape: bf16[128,32], index: 1, kind: input, shape index: {}]   ;;  %s803_s2 = inlined_call_operand.vmem [shape: f32[1,32], index: 2, kind: input, shape index: {}]   ;;  %s804_s0 = inlined_call_operand.vmem [shape: bf16[256,128], index: 0, kind: input, shape index: {}]   ;;  %s805_s3 = inlined_call_operand.vmem [shape: bf16[256,32], index: 3, kind: output, shape index: {}]  }
   0x1   :  { %v519_v0 = vld [vmem:[%s802_s1 + $0x38] sm:$0xff]  ;;  %v518_v1 = vld [vmem:[%s802_s1 + $0x30] sm:$0xff]  ;;  %v517_v2 = vld [vmem:[%s802_s1 + $0x28] sm:$0xff] }
   0x2   :  { %210 = vmatpush.bf16.msra.mxu0 %v519_v0  ;;  %520 = vmatpush.bf16.msra.mxu1 %v519_v0  ;;  %v516_v3 = vld [vmem:[%s802_s1 + $0x20] sm:$0xff]  ;;  %v515_v4 = vld [vmem:[%s802_s1 + $0x18] sm:$0xff]  ;;  %v514_v5 = vld [vmem:[%s802_s1 + $0x10] sm:$0xff] }
   0x3   :  { %521 = vmatpush.bf16.msra.mxu2 %v519_v0  ;;  %522 = vmatpush.bf16.msra.mxu3 %v519_v0  ;;  %v513_v6 = vld [vmem:[%s802_s1 + $0x8] sm:$0xff]  ;;  %v512_v7 = vld [vmem:[%s802_s1] sm:$0xff]  ;;  %v498_v16 = vld [vmem:[%s804_s0 + $0x10] sm:$0xff] }
   0x4   :  { %v496_v8 = vld [vmem:[%s804_s0] sm:$0xff]  ;;  %v497_v12 = vld [vmem:[%s804_s0 + $0x8] sm:$0xff]  ;;  %v502_v17 = vld [vmem:[%s804_s0 + $0x30] sm:$0xff] }
   0x5   :  { %v500_v9 = vld [vmem:[%s804_s0 + $0x20] sm:$0xff]  ;;  %v501_v13 = vld [vmem:[%s804_s0 + $0x28] sm:$0xff]  ;;  %v506_v18 = vld [vmem:[%s804_s0 + $0x50] sm:$0xff] }
   0x6   :  { %211 = vmatpush.bf16.msra.mxu0 %v518_v1  ;;  %523 = vmatpush.bf16.msra.mxu1 %v518_v1  ;;  %v504_v10 = vld [vmem:[%s804_s0 + $0x40] sm:$0xff]  ;;  %v505_v14 = vld [vmem:[%s804_s0 + $0x48] sm:$0xff]  ;;  %v510_v19 = vld [vmem:[%s804_s0 + $0x70] sm:$0xff] }
   0x7   :  { %524 = vmatpush.bf16.msra.mxu2 %v518_v1  ;;  %525 = vmatpush.bf16.msra.mxu3 %v518_v1  ;;  %v508_v11 = vld [vmem:[%s804_s0 + $0x60] sm:$0xff]  ;;  %v509_v15 = vld [vmem:[%s804_s0 + $0x68] sm:$0xff]  ;;  %v499_v20 = vld [vmem:[%s804_s0 + $0x18] sm:$0xff] }
   0x8   :  { %v503_v21 = vld [vmem:[%s804_s0 + $0x38] sm:$0xff]  ;;  %v640_v24 = vld [vmem:[%s803_s2] ss:$0 sm:$0xff] }
   0x9   :  { %v507_v22 = vld [vmem:[%s804_s0 + $0x58] sm:$0xff] }
   0xa   :  { %212 = vmatpush.bf16.msra.mxu0 %v517_v2  ;;  %526 = vmatpush.bf16.msra.mxu1 %v517_v2  ;;  %v511_v23 = vld [vmem:[%s804_s0 + $0x78] sm:$0xff] }
   0xb   :  { %527 = vmatpush.bf16.msra.mxu2 %v517_v2  ;;  %528 = vmatpush.bf16.msra.mxu3 %v517_v2 }
   0xe   :  { %213 = vmatpush.bf16.msra.mxu0 %v516_v3  ;;  %529 = vmatpush.bf16.msra.mxu1 %v516_v3 }
   0xf   :  { %530 = vmatpush.bf16.msra.mxu2 %v516_v3  ;;  %531 = vmatpush.bf16.msra.mxu3 %v516_v3 }
  0x12   :  { %214 = vmatpush.bf16.msra.mxu0 %v515_v4  ;;  %532 = vmatpush.bf16.msra.mxu1 %v515_v4 }
  0x13   :  { %533 = vmatpush.bf16.msra.mxu2 %v515_v4  ;;  %534 = vmatpush.bf16.msra.mxu3 %v515_v4 }
  0x16   :  { %215 = vmatpush.bf16.msra.mxu0 %v514_v5  ;;  %535 = vmatpush.bf16.msra.mxu1 %v514_v5 }
  0x17   :  { %536 = vmatpush.bf16.msra.mxu2 %v514_v5  ;;  %537 = vmatpush.bf16.msra.mxu3 %v514_v5 }
  0x1a   :  { %216 = vmatpush.bf16.msra.mxu0 %v513_v6  ;;  %538 = vmatpush.bf16.msra.mxu1 %v513_v6 }
  0x1b   :  { %539 = vmatpush.bf16.msra.mxu2 %v513_v6  ;;  %540 = vmatpush.bf16.msra.mxu3 %v513_v6 }
  0x1e   :  { %217 = vmatpush.bf16.msra.mxu0 %v512_v7  ;;  %541 = vmatpush.bf16.msra.mxu1 %v512_v7 }
  0x1f   :  { %542 = vmatpush.bf16.msra.mxu2 %v512_v7  ;;  %543 = vmatpush.bf16.msra.mxu3 %v512_v7 }
  0x21   :  { %218 = vmatmul.bf16.vlgmr.msra.gmra.mxu0 %v496_v8  ;;  %238 = vmatmul.bf16.vlgmr.msra.gmra.mxu1 %v500_v9 }
  0x22   :  { %258 = vmatmul.bf16.vlgmr.msra.gmra.mxu2 %v504_v10  ;;  %278 = vmatmul.bf16.vlgmr.msra.gmra.mxu3 %v508_v11 }
  0x31   :  { %223 = vmatmul.bf16.gmra.mxu0 %v497_v12  ;;  %243 = vmatmul.bf16.gmra.mxu1 %v501_v13 }
  0x32   :  { %263 = vmatmul.bf16.gmra.mxu2 %v505_v14  ;;  %283 = vmatmul.bf16.gmra.mxu3 %v509_v15 }
  0x41   :  { %228 = vmatmul.bf16.gmra.mxu0 %v498_v16  ;;  %248 = vmatmul.bf16.gmra.mxu1 %v502_v17 }
  0x42   :  { %268 = vmatmul.bf16.gmra.mxu2 %v506_v18  ;;  %288 = vmatmul.bf16.gmra.mxu3 %v510_v19 }
  0x51   :  { %233 = vmatmul.bf16.gmra.mxu0 %v499_v20  ;;  %253 = vmatmul.bf16.gmra.mxu1 %v503_v21 }
  0x52   :  { %273 = vmatmul.bf16.gmra.mxu2 %v507_v22  ;;  %293 = vmatmul.bf16.gmra.mxu3 %v511_v23 }
  0x9e   :  { %v219_v25 = vpop.f32.mrf.mxu0  ;;  %v239_v26 = vpop.f32.mrf.mxu1 }
  0x9f   :  { %v220_v27 = vadd.f32 %v640_v24, %v219_v25  ;;  %v240_v28 = vadd.f32 %v640_v24, %v239_v26 }
  0xa1   :  { %v299_v29 = vmax.f32 %v220_v27, 0.0  ;;  %v307_v30 = vmax.f32 %v240_v28, 0.0 }
  0xa3   :  { %v331_v31 = vpack.c.bf16 %v299_v29, %v299_v29  ;;  %v339_v32 = vpack.c.bf16 %v307_v30, %v307_v30 }
  0xa5   :  { %364 = vst.msk [vmem:[%s805_s3] sm:$0xf] %vm363_vm0, %v331_v31  ;;  %v259_v33 = vpop.f32.mrf.mxu2  ;;  %v279_v34 = vpop.f32.mrf.mxu3 }
  0xa6   :  { %372 = vst.msk [vmem:[%s805_s3 + $0x20] sm:$0xf] %vm363_vm0, %v339_v32  ;;  %v260_v35 = vadd.f32 %v640_v24, %v259_v33  ;;  %v280_v36 = vadd.f32 %v640_v24, %v279_v34  ;;  %v221_v37 = vpop.f32.mrf.mxu0  ;;  %v241_v38 = vpop.f32.mrf.mxu1 }
  0xa7   :  { %v222_v39 = vadd.f32 %v640_v24, %v221_v37  ;;  %v242_v40 = vadd.f32 %v640_v24, %v241_v38 }
  0xa8   :  { %v315_v41 = vmax.f32 %v260_v35, 0.0  ;;  %v323_v42 = vmax.f32 %v280_v36, 0.0 }
  0xa9   :  { %v300_v43 = vmax.f32 %v222_v39, 0.0  ;;  %v308_v44 = vmax.f32 %v242_v40, 0.0 }
  0xaa   :  { %v347_v45 = vpack.c.bf16 %v315_v41, %v315_v41  ;;  %v355_v46 = vpack.c.bf16 %v323_v42, %v323_v42 }
  0xab   :  { %v332_v47 = vpack.c.bf16 %v300_v43, %v300_v43  ;;  %v340_v48 = vpack.c.bf16 %v308_v44, %v308_v44 }
  0xac   :  { %380 = vst.msk [vmem:[%s805_s3 + $0x40] sm:$0xf] %vm363_vm0, %v347_v45 }
  0xad   :  { %388 = vst.msk [vmem:[%s805_s3 + $0x60] sm:$0xf] %vm363_vm0, %v355_v46  ;;  %v261_v49 = vpop.f32.mrf.mxu2  ;;  %v281_v50 = vpop.f32.mrf.mxu3 }
  0xae   :  { %365 = vst.msk [vmem:[%s805_s3 + $0x4] sm:$0xf] %vm363_vm0, %v332_v47  ;;  %v262_v51 = vadd.f32 %v640_v24, %v261_v49  ;;  %v282_v52 = vadd.f32 %v640_v24, %v281_v50  ;;  %v224_v53 = vpop.f32.mrf.mxu0  ;;  %v244_v54 = vpop.f32.mrf.mxu1 }
  0xaf   :  { %373 = vst.msk [vmem:[%s805_s3 + $0x24] sm:$0xf] %vm363_vm0, %v340_v48  ;;  %v225_v55 = vadd.f32 %v640_v24, %v224_v53  ;;  %v245_v56 = vadd.f32 %v640_v24, %v244_v54 }
  0xb0   :  { %v316_v57 = vmax.f32 %v262_v51, 0.0  ;;  %v324_v58 = vmax.f32 %v282_v52, 0.0 }
  0xb1   :  { %v301_v59 = vmax.f32 %v225_v55, 0.0  ;;  %v309_v60 = vmax.f32 %v245_v56, 0.0 }
  0xb2   :  { %v348_v61 = vpack.c.bf16 %v316_v57, %v316_v57  ;;  %v356_v62 = vpack.c.bf16 %v324_v58, %v324_v58 }
  0xb3   :  { %v333_v63 = vpack.c.bf16 %v301_v59, %v301_v59  ;;  %v341_v0 = vpack.c.bf16 %v309_v60, %v309_v60 }
  0xb4   :  { %381 = vst.msk [vmem:[%s805_s3 + $0x44] sm:$0xf] %vm363_vm0, %v348_v61 }
  0xb5   :  { %389 = vst.msk [vmem:[%s805_s3 + $0x64] sm:$0xf] %vm363_vm0, %v356_v62  ;;  %v264_v1 = vpop.f32.mrf.mxu2  ;;  %v284_v2 = vpop.f32.mrf.mxu3 }
  0xb6   :  { %366 = vst.msk [vmem:[%s805_s3 + $0x8] sm:$0xf] %vm363_vm0, %v333_v63  ;;  %v265_v3 = vadd.f32 %v640_v24, %v264_v1  ;;  %v285_v4 = vadd.f32 %v640_v24, %v284_v2  ;;  %v226_v5 = vpop.f32.mrf.mxu0  ;;  %v246_v6 = vpop.f32.mrf.mxu1 }
  0xb7   :  { %374 = vst.msk [vmem:[%s805_s3 + $0x28] sm:$0xf] %vm363_vm0, %v341_v0  ;;  %v227_v7 = vadd.f32 %v640_v24, %v226_v5  ;;  %v247_v8 = vadd.f32 %v640_v24, %v246_v6 }
  0xb8   :  { %v317_v9 = vmax.f32 %v265_v3, 0.0  ;;  %v325_v10 = vmax.f32 %v285_v4, 0.0 }
  0xb9   :  { %v302_v11 = vmax.f32 %v227_v7, 0.0  ;;  %v310_v12 = vmax.f32 %v247_v8, 0.0 }
  0xba   :  { %v349_v13 = vpack.c.bf16 %v317_v9, %v317_v9  ;;  %v357_v14 = vpack.c.bf16 %v325_v10, %v325_v10 }
  0xbb   :  { %v334_v15 = vpack.c.bf16 %v302_v11, %v302_v11  ;;  %v342_v16 = vpack.c.bf16 %v310_v12, %v310_v12 }
  0xbc   :  { %382 = vst.msk [vmem:[%s805_s3 + $0x48] sm:$0xf] %vm363_vm0, %v349_v13 }
  0xbd   :  { %390 = vst.msk [vmem:[%s805_s3 + $0x68] sm:$0xf] %vm363_vm0, %v357_v14  ;;  %v266_v17 = vpop.f32.mrf.mxu2  ;;  %v286_v18 = vpop.f32.mrf.mxu3 }
  0xbe   :  { %367 = vst.msk [vmem:[%s805_s3 + $0xc] sm:$0xf] %vm363_vm0, %v334_v15  ;;  %v267_v19 = vadd.f32 %v640_v24, %v266_v17  ;;  %v287_v20 = vadd.f32 %v640_v24, %v286_v18  ;;  %v229_v21 = vpop.f32.mrf.mxu0  ;;  %v249_v22 = vpop.f32.mrf.mxu1 }
  0xbf   :  { %375 = vst.msk [vmem:[%s805_s3 + $0x2c] sm:$0xf] %vm363_vm0, %v342_v16  ;;  %v230_v23 = vadd.f32 %v640_v24, %v229_v21  ;;  %v250_v25 = vadd.f32 %v640_v24, %v249_v22 }
  0xc0   :  { %v318_v26 = vmax.f32 %v267_v19, 0.0  ;;  %v326_v27 = vmax.f32 %v287_v20, 0.0 }
  0xc1   :  { %v303_v28 = vmax.f32 %v230_v23, 0.0  ;;  %v311_v29 = vmax.f32 %v250_v25, 0.0 }
  0xc2   :  { %v350_v30 = vpack.c.bf16 %v318_v26, %v318_v26  ;;  %v358_v31 = vpack.c.bf16 %v326_v27, %v326_v27 }
  0xc3   :  { %v335_v32 = vpack.c.bf16 %v303_v28, %v303_v28  ;;  %v343_v33 = vpack.c.bf16 %v311_v29, %v311_v29 }
  0xc4   :  { %383 = vst.msk [vmem:[%s805_s3 + $0x4c] sm:$0xf] %vm363_vm0, %v350_v30 }
  0xc5   :  { %391 = vst.msk [vmem:[%s805_s3 + $0x6c] sm:$0xf] %vm363_vm0, %v358_v31  ;;  %v269_v34 = vpop.f32.mrf.mxu2  ;;  %v289_v35 = vpop.f32.mrf.mxu3 }
  0xc6   :  { %368 = vst.msk [vmem:[%s805_s3 + $0x10] sm:$0xf] %vm363_vm0, %v335_v32  ;;  %v270_v36 = vadd.f32 %v640_v24, %v269_v34  ;;  %v290_v37 = vadd.f32 %v640_v24, %v289_v35  ;;  %v231_v38 = vpop.f32.mrf.mxu0  ;;  %v251_v39 = vpop.f32.mrf.mxu1 }
  0xc7   :  { %376 = vst.msk [vmem:[%s805_s3 + $0x30] sm:$0xf] %vm363_vm0, %v343_v33  ;;  %v232_v40 = vadd.f32 %v640_v24, %v231_v38  ;;  %v252_v41 = vadd.f32 %v640_v24, %v251_v39 }
  0xc8   :  { %v319_v42 = vmax.f32 %v270_v36, 0.0  ;;  %v327_v43 = vmax.f32 %v290_v37, 0.0 }
  0xc9   :  { %v304_v44 = vmax.f32 %v232_v40, 0.0  ;;  %v312_v45 = vmax.f32 %v252_v41, 0.0 }
  0xca   :  { %v351_v46 = vpack.c.bf16 %v319_v42, %v319_v42  ;;  %v359_v47 = vpack.c.bf16 %v327_v43, %v327_v43 }
  0xcb   :  { %v336_v48 = vpack.c.bf16 %v304_v44, %v304_v44  ;;  %v344_v49 = vpack.c.bf16 %v312_v45, %v312_v45 }
  0xcc   :  { %384 = vst.msk [vmem:[%s805_s3 + $0x50] sm:$0xf] %vm363_vm0, %v351_v46 }
  0xcd   :  { %392 = vst.msk [vmem:[%s805_s3 + $0x70] sm:$0xf] %vm363_vm0, %v359_v47  ;;  %v271_v50 = vpop.f32.mrf.mxu2  ;;  %v291_v51 = vpop.f32.mrf.mxu3 }
  0xce   :  { %369 = vst.msk [vmem:[%s805_s3 + $0x14] sm:$0xf] %vm363_vm0, %v336_v48  ;;  %v272_v52 = vadd.f32 %v640_v24, %v271_v50  ;;  %v292_v53 = vadd.f32 %v640_v24, %v291_v51  ;;  %v234_v54 = vpop.f32.mrf.mxu0  ;;  %v254_v55 = vpop.f32.mrf.mxu1 }
  0xcf   :  { %377 = vst.msk [vmem:[%s805_s3 + $0x34] sm:$0xf] %vm363_vm0, %v344_v49  ;;  %v235_v56 = vadd.f32 %v640_v24, %v234_v54  ;;  %v255_v57 = vadd.f32 %v640_v24, %v254_v55 }
  0xd0   :  { %v320_v58 = vmax.f32 %v272_v52, 0.0  ;;  %v328_v59 = vmax.f32 %v292_v53, 0.0 }
  0xd1   :  { %v305_v60 = vmax.f32 %v235_v56, 0.0  ;;  %v313_v61 = vmax.f32 %v255_v57, 0.0 }
  0xd2   :  { %v352_v62 = vpack.c.bf16 %v320_v58, %v320_v58  ;;  %v360_v63 = vpack.c.bf16 %v328_v59, %v328_v59 }
  0xd3   :  { %v337_v0 = vpack.c.bf16 %v305_v60, %v305_v60  ;;  %v345_v1 = vpack.c.bf16 %v313_v61, %v313_v61 }
  0xd4   :  { %385 = vst.msk [vmem:[%s805_s3 + $0x54] sm:$0xf] %vm363_vm0, %v352_v62 }
  0xd5   :  { %393 = vst.msk [vmem:[%s805_s3 + $0x74] sm:$0xf] %vm363_vm0, %v360_v63  ;;  %v274_v2 = vpop.f32.mrf.mxu2  ;;  %v294_v3 = vpop.f32.mrf.mxu3 }
  0xd6   :  { %370 = vst.msk [vmem:[%s805_s3 + $0x18] sm:$0xf] %vm363_vm0, %v337_v0  ;;  %v275_v4 = vadd.f32 %v640_v24, %v274_v2  ;;  %v295_v5 = vadd.f32 %v640_v24, %v294_v3  ;;  %v236_v6 = vpop.f32.mrf.mxu0  ;;  %v256_v7 = vpop.f32.mrf.mxu1 }
  0xd7   :  { %378 = vst.msk [vmem:[%s805_s3 + $0x38] sm:$0xf] %vm363_vm0, %v345_v1  ;;  %v237_v8 = vadd.f32 %v640_v24, %v236_v6  ;;  %v257_v9 = vadd.f32 %v640_v24, %v256_v7 }
  0xd8   :  { %v321_v10 = vmax.f32 %v275_v4, 0.0  ;;  %v329_v11 = vmax.f32 %v295_v5, 0.0 }
  0xd9   :  { %v306_v12 = vmax.f32 %v237_v8, 0.0  ;;  %v314_v13 = vmax.f32 %v257_v9, 0.0 }
  0xda   :  { %v353_v14 = vpack.c.bf16 %v321_v10, %v321_v10  ;;  %v361_v15 = vpack.c.bf16 %v329_v11, %v329_v11 }
  0xdb   :  { %v338_v16 = vpack.c.bf16 %v306_v12, %v306_v12  ;;  %v346_v17 = vpack.c.bf16 %v314_v13, %v314_v13 }
  0xdc   :  { %386 = vst.msk [vmem:[%s805_s3 + $0x58] sm:$0xf] %vm363_vm0, %v353_v14 }
  0xdd   :  { %394 = vst.msk [vmem:[%s805_s3 + $0x78] sm:$0xf] %vm363_vm0, %v361_v15  ;;  %v276_v18 = vpop.f32.mrf.mxu2  ;;  %v296_v19 = vpop.f32.mrf.mxu3 }
  0xde   :  { %371 = vst.msk [vmem:[%s805_s3 + $0x1c] sm:$0xf] %vm363_vm0, %v338_v16  ;;  %v277_v20 = vadd.f32 %v640_v24, %v276_v18  ;;  %v297_v21 = vadd.f32 %v640_v24, %v296_v19 }
  0xdf   :  { %379 = vst.msk [vmem:[%s805_s3 + $0x3c] sm:$0xf] %vm363_vm0, %v346_v17 }
  0xe0   :  { %v322_v22 = vmax.f32 %v277_v20, 0.0  ;;  %v330_v23 = vmax.f32 %v297_v21, 0.0 }
  0xe2   :  { %v354_v25 = vpack.c.bf16 %v322_v22, %v322_v22  ;;  %v362_v26 = vpack.c.bf16 %v330_v23, %v330_v23 }
  0xe4   :  { %387 = vst.msk [vmem:[%s805_s3 + $0x5c] sm:$0xf] %vm363_vm0, %v354_v25 }
  0xe5   :  { %395 = vst.msk [vmem:[%s805_s3 + $0x7c] sm:$0xf] %vm363_vm0, %v362_v26 }

// kernel: video_encoder_forward.4
= control target key start
LH: loop header
LB: loop body
LE: loop exit
PB: predicated region body
PF: predicated region fallthrough
CT: control target
= control target key end

     0   :  { %vm239_vm0 = vcmask 261120   ;;  %vm355_vm1 = vcmask 519168   ;;  %s724_s1 = inlined_call_operand.vmem [shape: bf16[288,64], index: 1, kind: input, shape index: {}]   ;;  %s725_s0 = inlined_call_operand.vmem [shape: bf16[64,288], index: 0, kind: input, shape index: {}]   ;;  %s726_s2 = inlined_call_operand.vmem [shape: f32[1,64], index: 2, kind: input, shape index: {}]   ;;  %s727_s3 = inlined_call_operand.vmem [shape: bf16[64,64], index: 3, kind: output, shape index: {}]  }
   0x1   :  { %v511_v0 = vld [vmem:[%s724_s1 + $0x38] sm:$0xff]  ;;  %v521_v2 = vld [vmem:[%s724_s1 + $0x88] sm:$0xff]  ;;  %v510_v3 = vld [vmem:[%s724_s1 + $0x30] sm:$0xff] }
   0x2   :  { %v519_v1 = vld [vmem:[%s724_s1 + $0x78] sm:$0xff]  ;;  %252 = vmatpush.bf16.msra.mxu0 %v511_v0  ;;  %522 = vmatpush.bf16.msra.mxu3 %v511_v0  ;;  %v518_v4 = vld [vmem:[%s724_s1 + $0x70] sm:$0xff]  ;;  %v520_v5 = vld [vmem:[%s724_s1 + $0x80] sm:$0xff] }
   0x3   :  { %530 = vmatpush.bf16.msra.mxu1 %v519_v1  ;;  %316 = vmatpush.bf16.msra.mxu2 %v521_v2  ;;  %v378_v6 = vld [vmem:[%s725_s0 + $0x8] sm:$0xf]  ;;  %v494_v7 = vld [vmem:[%s725_s0 + $0x10] sm:$0xf0]  ;;  %v508_v11 = vld [vmem:[%s724_s1 + $0x20] sm:$0xff] }
   0x4   :  { %v509_v8 = vld [vmem:[%s724_s1 + $0x28] sm:$0xff]  ;;  %v379_v10 = vor.u32 %v494_v7, %v378_v6  ;;  %v516_v12 = vld [vmem:[%s724_s1 + $0x60] sm:$0xff]  ;;  %v507_v13 = vld [vmem:[%s724_s1 + $0x18] sm:$0xff] }
   0x5   :  { %v517_v9 = vld [vmem:[%s724_s1 + $0x68] sm:$0xff]  ;;  %v515_v14 = vld [vmem:[%s724_s1 + $0x58] sm:$0xff]  ;;  %v506_v15 = vld [vmem:[%s724_s1 + $0x10] sm:$0xff] }
   0x6   :  { %253 = vmatpush.bf16.msra.mxu0 %v510_v3  ;;  %523 = vmatpush.bf16.msra.mxu3 %v510_v3  ;;  %v514_v16 = vld [vmem:[%s724_s1 + $0x50] sm:$0xff]  ;;  %v390_v17 = vld [vmem:[%s725_s0 + $0x20] sm:$0xf]  ;;  %v497_v18 = vld [vmem:[%s725_s0 + $0x28] sm:$0xf0] }
   0x7   :  { %531 = vmatpush.bf16.msra.mxu1 %v518_v4  ;;  %317 = vmatpush.bf16.msra.mxu2 %v520_v5  ;;  %v505_v19 = vld [vmem:[%s724_s1 + $0x8] sm:$0xff]  ;;  %v391_v21 = vor.u32 %v497_v18, %v390_v17  ;;  %v504_v22 = vld [vmem:[%s724_s1] sm:$0xff]  ;;  %v382_v23 = vld [vmem:[%s725_s0 + $0x18] sm:$0xf] }
   0x8   :  { %v513_v20 = vld [vmem:[%s724_s1 + $0x48] sm:$0xff]  ;;  %v496_v24 = vld [vmem:[%s725_s0 + $0x20] sm:$0xf0]  ;;  %v370_v25 = vld [vmem:[%s725_s0] sm:$0xf] }
   0x9   :  { %v493_v26 = vld [vmem:[%s725_s0 + $0x8] sm:$0xf0]  ;;  %v512_v27 = vld [vmem:[%s724_s1 + $0x40] sm:$0xff]  ;;  %v495_v28 = vld [vmem:[%s725_s0 + $0x1c] sm:$0xf]  ;;  %v383_v30 = vor.u32 %v496_v24, %v382_v23 }
   0xa   :  { %254 = vmatpush.bf16.msra.mxu0 %v509_v8  ;;  %524 = vmatpush.bf16.msra.mxu3 %v509_v8  ;;  %v384_v29 = vld [vmem:[%s725_s0 + $0x24] sm:$0xf0]  ;;  %v371_v31 = vor.u32 %v493_v26, %v370_v25  ;;  %v402_v33 = vld [vmem:[%s725_s0 + $0x38] sm:$0xf]  ;;  %v500_v34 = vld [vmem:[%s725_s0 + $0x40] sm:$0xf0] }
   0xb   :  { %532 = vmatpush.bf16.msra.mxu1 %v517_v9  ;;  %488 = vmatmul.msk.bf16.vlgmr.msra.gmra.mxu2 %vm239_vm0, %v379_v10  ;;  %v387_v32 = vor.u32 %v495_v28, %v384_v29  ;;  %v403_v35 = vor.u32 %v500_v34, %v402_v33  ;;  %v394_v36 = vld [vmem:[%s725_s0 + $0x30] sm:$0xf]  ;;  %v499_v37 = vld [vmem:[%s725_s0 + $0x38] sm:$0xf0]  ;;  %v498_v38 = vld [vmem:[%s725_s0 + $0x34] sm:$0xf] }
   0xc   :  { %v396_v39 = vld [vmem:[%s725_s0 + $0x3c] sm:$0xf0]  ;;  %v395_v40 = vor.u32 %v499_v37, %v394_v36  ;;  %v414_v42 = vld [vmem:[%s725_s0 + $0x50] sm:$0xf]  ;;  %v503_v43 = vld [vmem:[%s725_s0 + $0x58] sm:$0xf0] }
   0xd   :  { %v399_v41 = vor.u32 %v498_v38, %v396_v39  ;;  %v415_v44 = vor.u32 %v503_v43, %v414_v42  ;;  %v492_v45 = vld [vmem:[%s725_s0 + $0x4] sm:$0xf]  ;;  %v372_v46 = vld [vmem:[%s725_s0 + $0xc] sm:$0xf0]  ;;  %v406_v48 = vld [vmem:[%s725_s0 + $0x48] sm:$0xf] }
   0xe   :  { %255 = vmatpush.bf16.msra.mxu0 %v508_v11  ;;  %525 = vmatpush.bf16.msra.mxu3 %v508_v11  ;;  %v375_v47 = vor.u32 %v492_v45, %v372_v46  ;;  %v502_v49 = vld [vmem:[%s725_s0 + $0x50] sm:$0xf0]  ;;  %v501_v50 = vld [vmem:[%s725_s0 + $0x4c] sm:$0xf]  ;;  %v408_v51 = vld [vmem:[%s725_s0 + $0x54] sm:$0xf0] }
   0xf   :  { %533 = vmatpush.bf16.msra.mxu1 %v516_v12  ;;  %v407_v52 = vor.u32 %v502_v49, %v406_v48  ;;  %v411_v53 = vor.u32 %v501_v50, %v408_v51  ;;  %v538_v58 = vld [vmem:[%s726_s2] ss:$0 sm:$0xff] }
  0x12   :  { %256 = vmatpush.bf16.msra.mxu0 %v507_v13  ;;  %526 = vmatpush.bf16.msra.mxu3 %v507_v13 }
  0x13   :  { %534 = vmatpush.bf16.msra.mxu1 %v515_v14 }
  0x16   :  { %257 = vmatpush.bf16.msra.mxu0 %v506_v15  ;;  %527 = vmatpush.bf16.msra.mxu3 %v506_v15 }
  0x17   :  { %535 = vmatpush.bf16.msra.mxu1 %v514_v16 }
  0x1a   :  { %258 = vmatpush.bf16.msra.mxu0 %v505_v19  ;;  %528 = vmatpush.bf16.msra.mxu3 %v505_v19 }
  0x1b   :  { %536 = vmatpush.bf16.msra.mxu1 %v513_v20  ;;  %489 = vmatmul.msk.bf16.gmra.mxu2 %vm239_vm0, %v391_v21 }
  0x1e   :  { %259 = vmatpush.bf16.msra.mxu0 %v504_v22  ;;  %529 = vmatpush.bf16.msra.mxu3 %v504_v22 }
  0x1f   :  { %537 = vmatpush.bf16.msra.mxu1 %v512_v27 }
  0x21   :  { %265 = vmatmul.bf16.vlgmr.msra.gmra.mxu3 %v383_v30  ;;  %260 = vmatmul.bf16.vlgmr.msra.gmra.mxu0 %v371_v31 }
  0x22   :  { %281 = vmatpush.bf16.msrb.mxu0 %v519_v1  ;;  %294 = vmatmul.bf16.vlgmr.msra.gmra.mxu1 %v387_v32 }
  0x26   :  { %282 = vmatpush.bf16.msrb.mxu0 %v518_v4 }
  0x2a   :  { %283 = vmatpush.bf16.msrb.mxu0 %v517_v9 }
  0x2b   :  { %490 = vmatmul.msk.bf16.gmra.mxu2 %vm239_vm0, %v403_v35 }
  0x2e   :  { %284 = vmatpush.bf16.msrb.mxu0 %v516_v12 }
  0x31   :  { %270 = vmatmul.bf16.gmra.mxu3 %v395_v40 }
  0x32   :  { %285 = vmatpush.bf16.msrb.mxu0 %v515_v14  ;;  %299 = vmatmul.bf16.gmra.mxu1 %v399_v41 }
  0x36   :  { %286 = vmatpush.bf16.msrb.mxu0 %v514_v16 }
  0x3a   :  { %287 = vmatpush.bf16.msrb.mxu0 %v513_v20 }
  0x3b   :  { %491 = vmatmul.msk.bf16.gmra.mxu2 %vm239_vm0, %v415_v44 }
  0x3e   :  { %288 = vmatpush.bf16.msrb.mxu0 %v512_v27 }
  0x41   :  { %289 = vmatmul.bf16.vlgmr.msrb.gmra.mxu0 %v375_v47  ;;  %275 = vmatmul.bf16.gmra.mxu3 %v407_v52 }
  0x42   :  { %304 = vmatmul.bf16.gmra.mxu1 %v411_v53 }
  0x8e   :  { %v319_v54 = vpop.f32.mrf.mxu2 }
  0x96   :  { %v321_v55 = vpop.f32.mrf.mxu2 }
  0x9e   :  { %v324_v56 = vpop.f32.mrf.mxu2  ;;  %v261_v63 = vpop.f32.mrf.mxu0 }
  0x9f   :  { %v295_v57 = vpop.f32.mrf.mxu1  ;;  %v262_v17 = vadd.f32 %v538_v58, %v261_v63 }
  0xa4   :  { %v266_v59 = vpop.f32.mrf.mxu3 }
  0xa5   :  { %v267_v60 = vadd.f32 %v538_v58, %v266_v59 }
  0xa6   :  { %v326_v0 = vpop.f32.mrf.mxu2  ;;  %v263_v9 = vpop.f32.mrf.mxu0 }
  0xa7   :  { %v296_v61 = vadd.f32 %v295_v57, %v267_v60  ;;  %v297_v62 = vpop.f32.mrf.mxu1  ;;  %v264_v30 = vadd.f32 %v538_v58, %v263_v9 }
  0xa9   :  { %v325_v1 = vadd.f32 %v324_v56, %v296_v61 }
  0xab   :  { %v341_v2 = vmax.f32 %v325_v1, 0.0 }
  0xac   :  { %v268_v3 = vpop.f32.mrf.mxu3 }
  0xad   :  { %v349_v4 = vpack.c.bf16 %v341_v2, %v341_v2  ;;  %v269_v5 = vadd.f32 %v538_v58, %v268_v3 }
  0xae   :  { %v329_v10 = vpop.f32.mrf.mxu2 }
  0xaf   :  { %358 = vst.msk [vmem:[%s727_s3 + $0x8] sm:$0xf] %vm355_vm1, %v349_v4  ;;  %v298_v6 = vadd.f32 %v297_v62, %v269_v5  ;;  %v300_v7 = vpop.f32.mrf.mxu1 }
  0xb1   :  { %v327_v8 = vadd.f32 %v326_v0, %v298_v6 }
  0xb3   :  { %v342_v11 = vmax.f32 %v327_v8, 0.0 }
  0xb4   :  { %v271_v12 = vpop.f32.mrf.mxu3 }
  0xb5   :  { %v350_v13 = vpack.c.bf16 %v342_v11, %v342_v11  ;;  %v272_v14 = vadd.f32 %v538_v58, %v271_v12 }
  0xb6   :  { %v331_v21 = vpop.f32.mrf.mxu2 }
  0xb7   :  { %359 = vst.msk [vmem:[%s727_s3 + $0xc] sm:$0xf] %vm355_vm1, %v350_v13  ;;  %v301_v15 = vadd.f32 %v300_v7, %v272_v14  ;;  %v302_v18 = vpop.f32.mrf.mxu1 }
  0xb9   :  { %v330_v16 = vadd.f32 %v329_v10, %v301_v15 }
  0xbb   :  { %v343_v19 = vmax.f32 %v330_v16, 0.0 }
  0xbc   :  { %v273_v23 = vpop.f32.mrf.mxu3 }
  0xbd   :  { %v351_v24 = vpack.c.bf16 %v343_v19, %v343_v19  ;;  %v274_v25 = vadd.f32 %v538_v58, %v273_v23 }
  0xbe   :  { %v290_v20 = vpop.f32.mrf.mxu0  ;;  %v334_v39 = vpop.f32.mrf.mxu2 }
  0xbf   :  { %v291_v22 = vadd.f32 %v290_v20, %v262_v17  ;;  %360 = vst.msk [vmem:[%s727_s3 + $0x10] sm:$0xf] %vm355_vm1, %v351_v24  ;;  %v303_v27 = vadd.f32 %v302_v18, %v274_v25  ;;  %v305_v34 = vpop.f32.mrf.mxu1 }
  0xc1   :  { %v320_v26 = vadd.f32 %v319_v54, %v291_v22  ;;  %v332_v29 = vadd.f32 %v331_v21, %v303_v27 }
  0xc3   :  { %v339_v28 = vmax.f32 %v320_v26, 0.0  ;;  %v344_v32 = vmax.f32 %v332_v29, 0.0 }
  0xc4   :  { %v276_v36 = vpop.f32.mrf.mxu3 }
  0xc5   :  { %v347_v31 = vpack.c.bf16 %v339_v28, %v339_v28  ;;  %v352_v37 = vpack.c.bf16 %v344_v32, %v344_v32  ;;  %v277_v38 = vadd.f32 %v538_v58, %v276_v36 }
  0xc6   :  { %v292_v33 = vpop.f32.mrf.mxu0  ;;  %v336_v51 = vpop.f32.mrf.mxu2 }
  0xc7   :  { %356 = vst.msk [vmem:[%s727_s3] sm:$0xf] %vm355_vm1, %v347_v31  ;;  %v293_v35 = vadd.f32 %v292_v33, %v264_v30  ;;  %v306_v41 = vadd.f32 %v305_v34, %v277_v38  ;;  %v307_v49 = vpop.f32.mrf.mxu1 }
  0xc8   :  { %361 = vst.msk [vmem:[%s727_s3 + $0x14] sm:$0xf] %vm355_vm1, %v352_v37 }
  0xc9   :  { %v322_v40 = vadd.f32 %v321_v55, %v293_v35  ;;  %v335_v43 = vadd.f32 %v334_v39, %v306_v41 }
  0xcb   :  { %v340_v42 = vmax.f32 %v322_v40, 0.0  ;;  %v345_v45 = vmax.f32 %v335_v43, 0.0 }
  0xcc   :  { %v278_v46 = vpop.f32.mrf.mxu3 }
  0xcd   :  { %v348_v44 = vpack.c.bf16 %v340_v42, %v340_v42  ;;  %v353_v47 = vpack.c.bf16 %v345_v45, %v345_v45  ;;  %v279_v48 = vadd.f32 %v538_v58, %v278_v46 }
  0xcf   :  { %357 = vst.msk [vmem:[%s727_s3 + $0x4] sm:$0xf] %vm355_vm1, %v348_v44  ;;  %v308_v50 = vadd.f32 %v307_v49, %v279_v48 }
  0xd0   :  { %362 = vst.msk [vmem:[%s727_s3 + $0x18] sm:$0xf] %vm355_vm1, %v353_v47 }
  0xd1   :  { %v337_v52 = vadd.f32 %v336_v51, %v308_v50 }
  0xd3   :  { %v346_v53 = vmax.f32 %v337_v52, 0.0 }
  0xd5   :  { %v354_v54 = vpack.c.bf16 %v346_v53, %v346_v53 }
  0xd7   :  { %363 = vst.msk [vmem:[%s727_s3 + $0x1c] sm:$0xf] %vm355_vm1, %v354_v54 }

// kernel: video_encoder_forward.5
= control target key start
LH: loop header
LB: loop body
LE: loop exit
PB: predicated region body
PF: predicated region fallthrough
CT: control target
= control target key end

     0   :  { %s1455_s0 = inlined_call_operand.vmem [shape: bf16[4,16,576], index: 0, kind: input, shape index: {}]   ;;  %s1456_s1 = inlined_call_operand.vmem [shape: bf16[576,128], index: 1, kind: input, shape index: {}]   ;;  %s1457_s2 = inlined_call_operand.vmem [shape: f32[1,128], index: 2, kind: input, shape index: {}]   ;;  %s1458_s3 = inlined_call_operand.vmem [shape: bf16[128,128], index: 3, kind: input, shape index: {}]   ;;  %s1459_s4 = inlined_call_operand.vmem [shape: f32[1,128], index: 4, kind: input, shape index: {}]   ;;  %s1460_s5 = inlined_call_operand.hbm [shape: f32[1,4,128], index: 5, kind: output, shape index: {}]  }
   0x1   :  { %v1063_v0 = vld [vmem:[%s1456_s1 + $0x38] sm:$0xff]  ;;  %v1062_v2 = vld [vmem:[%s1456_s1 + $0x30] sm:$0xff]  ;;  %v1061_v5 = vld [vmem:[%s1456_s1 + $0x28] sm:$0xff] }
   0x2   :  { %v1071_v1 = vld [vmem:[%s1456_s1 + $0x78] sm:$0xff]  ;;  %1100 = vmatpush.bf16.msra.mxu2 %v1063_v0  ;;  %v1070_v3 = vld [vmem:[%s1456_s1 + $0x70] sm:$0xff]  ;;  %456 = vmatpush.bf16.msra.mxu0 %v1063_v0  ;;  %v1069_v6 = vld [vmem:[%s1456_s1 + $0x68] sm:$0xff] }
   0x3   :  { %485 = vmatpush.bf16.msra.mxu1 %v1071_v1  ;;  %v1087_v4 = vld [vmem:[%s1456_s1 + $0xf8] sm:$0xff]  ;;  %v1086_v7 = vld [vmem:[%s1456_s1 + $0xf0] sm:$0xff]  ;;  %v1060_v8 = vld [vmem:[%s1456_s1 + $0x20] sm:$0xff] }
   0x4   :  { %543 = vmatpush.bf16.msra.mxu3 %v1087_v4  ;;  %v1068_v9 = vld [vmem:[%s1456_s1 + $0x60] sm:$0xff]  ;;  %v1085_v10 = vld [vmem:[%s1456_s1 + $0xe8] sm:$0xff] }
   0x6   :  { %1101 = vmatpush.bf16.msra.mxu2 %v1062_v2  ;;  %457 = vmatpush.bf16.msra.mxu0 %v1062_v2 }
   0x7   :  { %486 = vmatpush.bf16.msra.mxu1 %v1070_v3 }
   0x8   :  { %544 = vmatpush.bf16.msra.mxu3 %v1086_v7 }
   0xa   :  { %1102 = vmatpush.bf16.msra.mxu2 %v1061_v5  ;;  %458 = vmatpush.bf16.msra.mxu0 %v1061_v5 }
   0xb   :  { %487 = vmatpush.bf16.msra.mxu1 %v1069_v6 }
   0xc   :  { %10 = vsyncpa [#allocation4], 0  ;;  %v1059_v11 = vld [vmem:[%s1456_s1 + $0x18] sm:$0xff]  ;;  %545 = vmatpush.bf16.msra.mxu3 %v1085_v10  ;;  %v1084_v13 = vld [vmem:[%s1456_s1 + $0xe0] sm:$0xff]  ;;  %vm443_vm0 = vcmask 523264   ;;  %vm663_vm2 = vcmask 1041409  }
   0xd   :  { %v1067_v12 = vld [vmem:[%s1456_s1 + $0x58] sm:$0xff]  ;;  %v1058_v14 = vld [vmem:[%s1456_s1 + $0x10] sm:$0xff]  ;;  %v1057_v17 = vld [vmem:[%s1456_s1 + $0x8] sm:$0xff]  ;;  %vm665_vm3 = vcmask 1042434   ;;  %vm667_vm4 = vcmask 1043459   ;;  %s1139_s9 = smov [#allocation3]  }
   0xe   :  { %1103 = vmatpush.bf16.msra.mxu2 %v1060_v8  ;;  %459 = vmatpush.bf16.msra.mxu0 %v1060_v8  ;;  %v1066_v15 = vld [vmem:[%s1456_s1 + $0x50] sm:$0xff]  ;;  %v1083_v16 = vld [vmem:[%s1456_s1 + $0xd8] sm:$0xff]  ;;  %v1065_v18 = vld [vmem:[%s1456_s1 + $0x48] sm:$0xff]  ;;  %s765_s10 = sshll.u32 %s1139_s9, 4  ;;  %s767_s13 = sshll.u32 %s1460_s5, 4  ;;  %s766_s10 = int_to_ptr.vmem [resolvable:$true] %s765_s10  ;;  %s768_s13 = int_to_ptr.hbm [resolvable:$true] %s767_s13 }
   0xf   :  { %488 = vmatpush.bf16.msra.mxu1 %v1068_v9  ;;  %v1082_v19 = vld [vmem:[%s1456_s1 + $0xd0] sm:$0xff]  ;;  %v1056_v20 = vld [vmem:[%s1456_s1] sm:$0xff]  ;;  %v780_v25 = vld [vmem:[%s1455_s0 + $0x14] sm:$0xf0] }
  0x10   :  { %546 = vmatpush.bf16.msra.mxu3 %v1084_v13  ;;  %v1064_v21 = vld [vmem:[%s1456_s1 + $0x40] sm:$0xff]  ;;  %v818_v22 = vld [vmem:[%s1455_s0 + $0x50] sm:$0xf]  ;;  %v1079_v26 = vld [vmem:[%s1456_s1 + $0xb8] sm:$0xff] }
  0x11   :  { %v1048_v23 = vld [vmem:[%s1455_s0 + $0x60] sm:$0xf0]  ;;  %v778_v27 = vld [vmem:[%s1455_s0] sm:$0xf]  ;;  %v1038_v28 = vld [vmem:[%s1455_s0 + $0x10] sm:$0xf0] }
  0x12   :  { %1104 = vmatpush.bf16.msra.mxu2 %v1059_v11  ;;  %460 = vmatpush.bf16.msra.mxu0 %v1059_v11  ;;  %v1036_v24 = vld [vmem:[%s1455_s0 + $0x4] sm:$0xf]  ;;  %v1091_v29 = vld [vmem:[%s1456_s1 + $0x118] sm:$0xff]  ;;  %v1081_v30 = vld [vmem:[%s1456_s1 + $0xc8] sm:$0xff]  ;;  %v819_v31 = vor.u32 %v1048_v23, %v818_v22  ;;  %v779_v33 = vor.u32 %v1038_v28, %v778_v27 }
  0x13   :  { %489 = vmatpush.bf16.msra.mxu1 %v1067_v12  ;;  %v783_v32 = vor.u32 %v1036_v24, %v780_v25  ;;  %v1078_v34 = vld [vmem:[%s1456_s1 + $0xb0] sm:$0xff]  ;;  %v1080_v36 = vld [vmem:[%s1456_s1 + $0xc0] sm:$0xff]  ;;  %v1037_v37 = vld [vmem:[%s1455_s0 + $0xc] sm:$0xf] }
  0x14   :  { %547 = vmatpush.bf16.msra.mxu3 %v1083_v16  ;;  %v1090_v35 = vld [vmem:[%s1456_s1 + $0x110] sm:$0xff]  ;;  %v788_v38 = vld [vmem:[%s1455_s0 + $0x1c] sm:$0xf0]  ;;  %v1077_v39 = vld [vmem:[%s1456_s1 + $0xa8] sm:$0xff] }
  0x15   :  { %v791_v40 = vor.u32 %v1037_v37, %v788_v38  ;;  %v1089_v41 = vld [vmem:[%s1456_s1 + $0x108] sm:$0xff]  ;;  %v1076_v42 = vld [vmem:[%s1456_s1 + $0xa0] sm:$0xff]  ;;  %v838_v44 = vld [vmem:[%s1455_s0 + $0x78] sm:$0xf] }
  0x16   :  { %1105 = vmatpush.bf16.msra.mxu2 %v1058_v14  ;;  %461 = vmatpush.bf16.msra.mxu0 %v1058_v14  ;;  %v1088_v43 = vld [vmem:[%s1456_s1 + $0x100] sm:$0xff]  ;;  %v1053_v45 = vld [vmem:[%s1455_s0 + $0x88] sm:$0xf0]  ;;  %v1075_v48 = vld [vmem:[%s1456_s1 + $0x98] sm:$0xff] }
  0x17   :  { %490 = vmatpush.bf16.msra.mxu1 %v1066_v15  ;;  %v1041_v46 = vld [vmem:[%s1455_s0 + $0x2c] sm:$0xf]  ;;  %v800_v47 = vld [vmem:[%s1455_s0 + $0x3c] sm:$0xf0]  ;;  %v798_v49 = vld [vmem:[%s1455_s0 + $0x28] sm:$0xf]  ;;  %v839_v51 = vor.u32 %v1053_v45, %v838_v44 }
  0x18   :  { %548 = vmatpush.bf16.msra.mxu3 %v1082_v19  ;;  %v1043_v50 = vld [vmem:[%s1455_s0 + $0x38] sm:$0xf0]  ;;  %v803_v52 = vor.u32 %v1041_v46, %v800_v47  ;;  %v1074_v54 = vld [vmem:[%s1456_s1 + $0x90] sm:$0xff]  ;;  %v808_v56 = vld [vmem:[%s1455_s0 + $0x44] sm:$0xf0] }
  0x19   :  { %v799_v53 = vor.u32 %v1043_v50, %v798_v49  ;;  %v1042_v55 = vld [vmem:[%s1455_s0 + $0x34] sm:$0xf]  ;;  %v1073_v57 = vld [vmem:[%s1456_s1 + $0x88] sm:$0xff]  ;;  %v1072_v59 = vld [vmem:[%s1456_s1 + $0x80] sm:$0xff] }
  0x1a   :  { %1106 = vmatpush.bf16.msra.mxu2 %v1057_v17  ;;  %462 = vmatpush.bf16.msra.mxu0 %v1057_v17  ;;  %v811_v58 = vor.u32 %v1042_v55, %v808_v56  ;;  %v1046_v60 = vld [vmem:[%s1455_s0 + $0x54] sm:$0xf]  ;;  %v820_v61 = vld [vmem:[%s1455_s0 + $0x64] sm:$0xf0]  ;;  %v1039_v63 = vld [vmem:[%s1455_s0 + $0x18] sm:$0xf0]  ;;  %v610_v55 = vlaneseq }
  0x1b   :  { %491 = vmatpush.bf16.msra.mxu1 %v1065_v18  ;;  %v786_v62 = vld [vmem:[%s1455_s0 + $0x8] sm:$0xf]  ;;  %v794_v0 = vld [vmem:[%s1455_s0 + $0x10] sm:$0xf]  ;;  %v1040_v1 = vld [vmem:[%s1455_s0 + $0x20] sm:$0xf0]  ;;  %v823_v2 = vor.u32 %v1046_v60, %v820_v61 }
  0x1c   :  { %549 = vmatpush.bf16.msra.mxu3 %v1081_v30  ;;  %v787_v3 = vor.u32 %v1039_v63, %v786_v62  ;;  %v795_v4 = vor.u32 %v1040_v1, %v794_v0  ;;  %v1047_v5 = vld [vmem:[%s1455_s0 + $0x5c] sm:$0xf]  ;;  %v828_v6 = vld [vmem:[%s1455_s0 + $0x6c] sm:$0xf0]  ;;  %v1044_v11 = vld [vmem:[%s1455_s0 + $0x40] sm:$0xf0] }
  0x1d   :  { %v831_v7 = vor.u32 %v1047_v5, %v828_v6  ;;  %v1051_v8 = vld [vmem:[%s1455_s0 + $0x7c] sm:$0xf]  ;;  %v840_v9 = vld [vmem:[%s1455_s0 + $0x8c] sm:$0xf0]  ;;  %v814_v12 = vld [vmem:[%s1455_s0 + $0x38] sm:$0xf] }
  0x1e   :  { %1107 = vmatpush.bf16.msra.mxu2 %v1056_v20  ;;  %463 = vmatpush.bf16.msra.mxu0 %v1056_v20  ;;  %v806_v10 = vld [vmem:[%s1455_s0 + $0x30] sm:$0xf]  ;;  %v1045_v13 = vld [vmem:[%s1455_s0 + $0x48] sm:$0xf0]  ;;  %v843_v14 = vor.u32 %v1051_v8, %v840_v9  ;;  %v1052_v17 = vld [vmem:[%s1455_s0 + $0x84] sm:$0xf] }
  0x1f   :  { %492 = vmatpush.bf16.msra.mxu1 %v1064_v21  ;;  %v807_v15 = vor.u32 %v1044_v11, %v806_v10  ;;  %v815_v16 = vor.u32 %v1045_v13, %v814_v12  ;;  %v848_v18 = vld [vmem:[%s1455_s0 + $0x94] sm:$0xf0]  ;;  %v1049_v21 = vld [vmem:[%s1455_s0 + $0x68] sm:$0xf0]  ;;  %v834_v22 = vld [vmem:[%s1455_s0 + $0x60] sm:$0xf] }
  0x20   :  { %550 = vmatpush.bf16.msra.mxu3 %v1080_v36  ;;  %v851_v19 = vor.u32 %v1052_v17, %v848_v18  ;;  %v826_v20 = vld [vmem:[%s1455_s0 + $0x58] sm:$0xf]  ;;  %v1050_v23 = vld [vmem:[%s1455_s0 + $0x70] sm:$0xf0]  ;;  %v854_v28 = vld [vmem:[%s1455_s0 + $0x88] sm:$0xf] }
  0x21   :  { %474 = vmatmul.bf16.vlgmr.msra.gmra.mxu2 %v819_v31  ;;  %464 = vmatmul.bf16.vlgmr.msra.gmra.mxu0 %v779_v33  ;;  %v827_v24 = vor.u32 %v1049_v21, %v826_v20  ;;  %v835_v25 = vor.u32 %v1050_v23, %v834_v22  ;;  %v1054_v27 = vld [vmem:[%s1455_s0 + $0x90] sm:$0xf0]  ;;  %v1405_v33 = vld [vmem:[%s1457_s2] ss:$0 sm:$0xff]  ;;  %v1410_v60 = vshrl.u32 %v610_v55, 7  ;;  %v1099_v61 = vld [vmem:[%s1458_s3 + $0x38] sm:$0xff] }
  0x22   :  { %514 = vmatpush.bf16.msrb.mxu2 %v1079_v26  ;;  %576 = vmatpush.bf16.msrb.mxu0 %v1091_v29  ;;  %v846_v26 = vld [vmem:[%s1455_s0 + $0x80] sm:$0xf]  ;;  %v1055_v29 = vld [vmem:[%s1455_s0 + $0x98] sm:$0xf0]  ;;  %v1098_v0 = vld [vmem:[%s1458_s3 + $0x30] sm:$0xff] }
  0x23   :  { %493 = vmatmul.bf16.vlgmr.msra.gmra.mxu1 %v783_v32  ;;  %551 = vmatmul.bf16.vlgmr.msra.gmra.mxu3 %v791_v40  ;;  %v847_v30 = vor.u32 %v1054_v27, %v846_v26  ;;  %v855_v31 = vor.u32 %v1055_v29, %v854_v28  ;;  %vm616_vm1 = vcmp.lt.s32.totalorder %v1410_v60, 4  ;;  %v1096_v22 = vld [vmem:[%s1458_s3 + $0x20] sm:$0xff] }
  0x24   :  { %746 = vmatpush.bf16.msrb.mxu1 %v1099_v61  ;;  %v1111_v60 = vld [vmem:[%s1459_s4] ss:$0 sm:$0xff] }
  0x26   :  { %515 = vmatpush.bf16.msrb.mxu2 %v1078_v34  ;;  %577 = vmatpush.bf16.msrb.mxu0 %v1090_v35 }
  0x28   :  { %747 = vmatpush.bf16.msrb.mxu1 %v1098_v0 }
  0x2a   :  { %516 = vmatpush.bf16.msrb.mxu2 %v1077_v39  ;;  %578 = vmatpush.bf16.msrb.mxu0 %v1089_v41 }
  0x2e   :  { %517 = vmatpush.bf16.msrb.mxu2 %v1076_v42  ;;  %579 = vmatpush.bf16.msrb.mxu0 %v1088_v43 }
  0x31   :  { %479 = vmatmul.bf16.gmra.mxu2 %v839_v51  ;;  %469 = vmatmul.bf16.gmra.mxu0 %v799_v53 }
  0x32   :  { %518 = vmatpush.bf16.msrb.mxu2 %v1075_v48 }
  0x33   :  { %498 = vmatmul.bf16.gmra.mxu1 %v803_v52  ;;  %556 = vmatmul.bf16.gmra.mxu3 %v811_v58 }
  0x36   :  { %519 = vmatpush.bf16.msrb.mxu2 %v1074_v54 }
  0x3a   :  { %520 = vmatpush.bf16.msrb.mxu2 %v1073_v57 }
  0x3e   :  { %521 = vmatpush.bf16.msrb.mxu2 %v1072_v59 }
  0x41   :  { %522 = vmatmul.bf16.vlgmr.msrb.gmra.mxu2 %v787_v3  ;;  %1000 = vmatmul.msk.bf16.vlgmr.msrb.gmra.mxu0 %vm443_vm0, %v795_v4 }
  0x43   :  { %503 = vmatmul.bf16.gmra.mxu1 %v823_v2  ;;  %561 = vmatmul.bf16.gmra.mxu3 %v831_v7 }
  0x51   :  { %527 = vmatmul.bf16.gmra.mxu2 %v807_v15  ;;  %1001 = vmatmul.msk.bf16.gmra.mxu0 %vm443_vm0, %v815_v16  ;;  %v1097_v16 = vld [vmem:[%s1458_s3 + $0x28] sm:$0xff] }
  0x52   :  { %748 = vmatpush.bf16.msrb.mxu1 %v1097_v16 }
  0x53   :  { %508 = vmatmul.bf16.gmra.mxu1 %v843_v14  ;;  %566 = vmatmul.bf16.gmra.mxu3 %v851_v19  ;;  %v1138_v19 = vmov 0.0  }
  0x54   :  { %26 = vst [vmem:[#allocation2] sm:$0xf] %v1138_v19 }
  0x56   :  { %749 = vmatpush.bf16.msrb.mxu1 %v1096_v22 }
  0x61   :  { %532 = vmatmul.bf16.gmra.mxu2 %v827_v24  ;;  %1002 = vmatmul.msk.bf16.gmra.mxu0 %vm443_vm0, %v835_v25 }
  0x71   :  { %537 = vmatmul.bf16.gmra.mxu2 %v847_v30  ;;  %1003 = vmatmul.msk.bf16.gmra.mxu0 %vm443_vm0, %v855_v31 }
  0x9e   :  { %v465_v34 = vpop.f32.mrf.mxu0 }
  0x9f   :  { %v466_v35 = vadd.f32 %v1405_v33, %v465_v34 }
  0xa0   :  { %v494_v32 = vpop.f32.mrf.mxu1 }
  0xa1   :  { %v495_v36 = vadd.f32 %v494_v32, %v466_v35 }
  0xa4   :  { %v475_v37 = vpop.f32.mrf.mxu2 }
  0xa5   :  { %v476_v28 = vadd.f32 %v1405_v33, %v475_v37 }
  0xa6   :  { %v467_v39 = vpop.f32.mrf.mxu0  ;;  %v552_v40 = vpop.f32.mrf.mxu3 }
  0xa8   :  { %v496_v38 = vpop.f32.mrf.mxu1 }
  0xac   :  { %v477_v41 = vpop.f32.mrf.mxu2 }
  0xae   :  { %v470_v43 = vpop.f32.mrf.mxu0  ;;  %v554_v44 = vpop.f32.mrf.mxu3 }
  0xaf   :  { %v471_v3 = vadd.f32 %v1405_v33, %v470_v43  ;;  %v1095_v43 = vld [vmem:[%s1458_s3 + $0x18] sm:$0xff] }
  0xb0   :  { %v499_v42 = vpop.f32.mrf.mxu1  ;;  %750 = vmatpush.bf16.msrb.mxu1 %v1095_v43 }
  0xb1   :  { %v500_v7 = vadd.f32 %v499_v42, %v471_v3 }
  0xb4   :  { %v1408_v45 = vpop.f32.mrf.mxu2 }
  0xb6   :  { %v472_v47 = vpop.f32.mrf.mxu0  ;;  %v557_v48 = vpop.f32.mrf.mxu3 }
  0xb8   :  { %v501_v46 = vpop.f32.mrf.mxu1 }
  0xbc   :  { %v482_v49 = vpop.f32.mrf.mxu2 }
  0xbe   :  { %v581_v51 = vpop.f32.mrf.mxu0  ;;  %v559_v52 = vpop.f32.mrf.mxu3 }
  0xc0   :  { %v504_v50 = vpop.f32.mrf.mxu1 }
  0xc1   :  { %v505_v31 = vadd.f32 %v504_v50, %v476_v28 }
  0xc4   :  { %v523_v53 = vpop.f32.mrf.mxu2 }
  0xc5   :  { %v524_v54 = vadd.f32 %v523_v53, %v495_v36 }
  0xc6   :  { %v583_v58 = vpop.f32.mrf.mxu0  ;;  %v562_v62 = vpop.f32.mrf.mxu3 }
  0xc7   :  { %v553_v57 = vadd.f32 %v552_v40, %v524_v54  ;;  %v481_v54 = vadd.f32 %v1405_v33, %v1408_v45 }
  0xc8   :  { %v506_v56 = vpop.f32.mrf.mxu1 }
  0xc9   :  { %v582_v59 = vadd.f32 %v581_v51, %v553_v57  ;;  %v1093_v51 = vld [vmem:[%s1458_s3 + $0x8] sm:$0xff]  ;;  %v1092_v56 = vld [vmem:[%s1458_s3] sm:$0xff] }
  0xcb   :  { %v601_v1 = vmax.f32 %v582_v59, 0.0 }
  0xcc   :  { %v525_v63 = vpop.f32.mrf.mxu2 }
  0xcd   :  { %v622_v5 = vsel %vm616_vm1, %v601_v1, 0.0 }
  0xce   :  { %v586_v4 = vpop.f32.mrf.mxu0  ;;  %v564_v6 = vpop.f32.mrf.mxu3  ;;  %v632_v8 = vrot.slane %v622_v5, 4 }
  0xd0   :  { %v509_v2 = vpop.f32.mrf.mxu1  ;;  %v633_v14 = vadd.f32 %v632_v8, %v622_v5 }
  0xd1   :  { %v510_v57 = vadd.f32 %v509_v2, %v481_v54 }
  0xd2   :  { %v634_v20 = vrot.slane %v633_v14, 2 }
  0xd4   :  { %v528_v9 = vpop.f32.mrf.mxu2  ;;  %v635_v26 = vadd.f32 %v634_v20, %v633_v14 }
  0xd5   :  { %v529_v10 = vadd.f32 %v528_v9, %v500_v7 }
  0xd6   :  { %v588_v13 = vpop.f32.mrf.mxu0  ;;  %v567_v17 = vpop.f32.mrf.mxu3  ;;  %v636_v32 = vrot.slane %v635_v26, 1 }
  0xd7   :  { %v558_v12 = vadd.f32 %v557_v48, %v529_v10  ;;  %v1094_v48 = vld [vmem:[%s1458_s3 + $0x10] sm:$0xff]  ;;  %v630_v10 = vld [vmem:[#allocation2] sm:$0xf] }
  0xd8   :  { %v511_v11 = vpop.f32.mrf.mxu1  ;;  %v637_v41 = vadd.f32 %v636_v32, %v635_v26  ;;  %751 = vmatpush.bf16.msrb.mxu1 %v1094_v48 }
  0xd9   :  { %v587_v15 = vadd.f32 %v586_v4, %v558_v12 }
  0xdb   :  { %v603_v18 = vmax.f32 %v587_v15, 0.0 }
  0xdc   :  { %v530_v21 = vpop.f32.mrf.mxu2  ;;  %752 = vmatpush.bf16.msrb.mxu1 %v1093_v51 }
  0xdd   :  { %v624_v23 = vsel %vm616_vm1, %v603_v18, 0.0 }
  0xde   :  { %v639_v24 = vrot.slane %v624_v23, 4  ;;  %v591_v25 = vpop.f32.mrf.mxu0  ;;  %v569_v30 = vpop.f32.mrf.mxu3 }
  0xe0   :  { %v640_v27 = vadd.f32 %v639_v24, %v624_v23  ;;  %753 = vmatpush.bf16.msrb.mxu1 %v1092_v56 }
  0xe2   :  { %v641_v29 = vrot.slane %v640_v27, 2 }
  0xe4   :  { %v642_v34 = vadd.f32 %v641_v29, %v640_v27  ;;  %v533_v35 = vpop.f32.mrf.mxu2 }
  0xe5   :  { %v534_v36 = vadd.f32 %v533_v35, %v505_v31 }
  0xe6   :  { %v643_v38 = vrot.slane %v642_v34, 1  ;;  %v593_v40 = vpop.f32.mrf.mxu0 }
  0xe7   :  { %v563_v39 = vadd.f32 %v562_v62, %v534_v36 }
  0xe8   :  { %v644_v42 = vadd.f32 %v643_v38, %v642_v34 }
  0xe9   :  { %v592_v44 = vadd.f32 %v591_v25, %v563_v39 }
  0xea   :  { %v664_v46 = vsel %vm663_vm2, %v644_v42, %v637_v41 }
  0xeb   :  { %v605_v37 = vmax.f32 %v592_v44, 0.0 }
  0xec   :  { %v535_v47 = vpop.f32.mrf.mxu2 }
  0xed   :  { %v626_v49 = vsel %vm616_vm1, %v605_v37, 0.0 }
  0xee   :  { %v646_v50 = vrot.slane %v626_v49, 4  ;;  %v596_v52 = vpop.f32.mrf.mxu0 }
  0xf0   :  { %v647_v53 = vadd.f32 %v646_v50, %v626_v49 }
  0xf2   :  { %v648_v55 = vrot.slane %v647_v53, 2 }
  0xf4   :  { %v649_v58 = vadd.f32 %v648_v55, %v647_v53  ;;  %v538_v59 = vpop.f32.mrf.mxu2 }
  0xf5   :  { %v539_v61 = vadd.f32 %v538_v59, %v510_v57 }
  0xf6   :  { %v650_v62 = vrot.slane %v649_v58, 1  ;;  %v598_v0 = vpop.f32.mrf.mxu0 }
  0xf7   :  { %v568_v63 = vadd.f32 %v567_v17, %v539_v61 }
  0xf8   :  { %v651_v1 = vadd.f32 %v650_v62, %v649_v58 }
  0xf9   :  { %v597_v3 = vadd.f32 %v596_v52, %v568_v63 }
  0xfa   :  { %v666_v4 = vsel %vm665_vm3, %v651_v1, %v664_v46 }
  0xfb   :  { %v607_v5 = vmax.f32 %v597_v3, 0.0 }
  0xfc   :  { %v540_v33 = vpop.f32.mrf.mxu2 }
  0xfd   :  { %v628_v45 = vsel %vm616_vm1, %v607_v5, 0.0 }
  0xfe   :  { %v653_v6 = vrot.slane %v628_v45, 4 }
 0x100   :  { %v654_v7 = vadd.f32 %v653_v6, %v628_v45 }
 0x102   :  { %v655_v8 = vrot.slane %v654_v7, 2 }
 0x104   :  { %v656_v2 = vadd.f32 %v655_v8, %v654_v7 }
 0x106   :  { %v657_v9 = vrot.slane %v656_v2, 1 }
 0x108   :  { %v658_v11 = vadd.f32 %v657_v9, %v656_v2 }
 0x10a   :  { %v668_v12 = vsel %vm667_vm4, %v658_v11, %v666_v4 }
 0x10b   :  { %v670_v13 = vadd.f32 %v668_v12, %v630_v10 }
 0x10d   :  { %671 = vst [vmem:[#allocation2] sm:$0xf] %v670_v13 }
 0x114   :  { %v675_v14 = vld [vmem:[#allocation2] sm:$0xf] }
 0x115   :  { %v676_v15 = vmul.f32 0.25, %v675_v14 }
 0x117   :  { %v677_v16 = vpack.c.bf16 %v676_v15, %v676_v15 }
 0x119   :  { %754 = vmatmul.bf16.vlgmr.msrb.gmra.mxu1 %v677_v16 }
 0x196   :  { %v755_v17 = vpop.f32.mrf.mxu1 }
 0x197   :  { %v756_v18 = vadd.f32 %v1111_v60, %v755_v17 }
 0x199   :  { %759 = vst [vmem:[#allocation3] sm:$0xf] %v756_v18 }
 0x19a   :  { %770 = dma.vmem_to_hbm [thread:$0]  %s766_s10, 64, %s768_s13, [#allocation4]  }
 0x19e   :  { %v757_v19 = vpop.f32.mrf.mxu1 }
 0x19f   :  { %1136 = dma.done.wait [#allocation4], 64  }
 0x1a0   :  { %1137 = vsyncadd [#allocation4], 4294967232 }
 0x1a1   :  { %775 = vsyncpa [#allocation4], 1 }

</bundles_post_ra>
